<compile_context>
chip_gen: v5e
topology: v5e:2x2
jax: 0.10.0
libtpu: 0.0.40
codegen_flags: <defaults>
</compile_context>

<pallas_src>
import functools

import jax
import jax.numpy as jnp
from jax.experimental import pallas as pl
from jax.experimental.pallas import tpu as pltpu


def _round_up(x, m):
    return ((x + m - 1) // m) * m


def _chip_vmem_limit_bytes():
    """Chip-aware scoped-VMEM limit: ~100 MiB on 128 MiB parts, ~56 MiB on v7x's 64 MiB parts."""
    cap = 128 * 1024 * 1024
    try:
        info = pltpu.get_tpu_info()
        got = int(getattr(info, "vmem_capacity_bytes", cap))
        if got > 0:
            cap = got
    except Exception:
        pass
    return int(min(cap - cap // 8, 100 * 1024 * 1024))


def _full_spec(shape):
    zeros = (0,) * len(shape)
    return pl.BlockSpec(shape, lambda *_: zeros)


# -----------------------------------------------------------------------------
# One AttentionBlockSE3 + NormSE3 layer (degree-0), tiled over destination rows.
# -----------------------------------------------------------------------------
def _attn_layer_kernel(e_ref, xf_ref, xt_ref, wkv_ref, wqs_ref, wrad_ref, wo_ref,
                       gamma_ref, beta_ref, y_ref, *,
                       num_heads, dh, dh_pad, n_valid, n_pad, tq, ce1):
    f32, bf16 = jnp.float32, jnp.bfloat16
    a_pad = num_heads * dh_pad

    xf = xf_ref[...].astype(bf16)                                   # [C_in, N_pad] (all sources)
    xt = xt_ref[...].astype(bf16)                                   # [C_in, tq]    (this tile)

    # Fattened MXU passes: K|V over all source nodes, Q|self-projection over the destination tile.
    kv = jnp.dot(wkv_ref[...], xf, preferred_element_type=f32)      # [2*A_pad, N_pad]
    qs = jnp.dot(wqs_ref[...], xt, preferred_element_type=f32)      # [A_pad + c_hid, tq]

    scale = 1.0 / float(dh) ** 0.5
    q3 = (qs[:a_pad] * scale).reshape(num_heads, dh_pad, tq).astype(bf16)
    y_self = qs[a_pad:]                                             # [c_hid, tq] f32 (skip path)
    k3 = kv[:a_pad].reshape(num_heads, dh_pad, n_pad).astype(bf16)
    v3 = kv[a_pad:].reshape(num_heads, dh_pad, n_pad).astype(bf16)

    # Radial modulation of the logits: one [tq, N_pad] plane per head, hoisted out of head math.
    # TODO(synk): for large Ce switch to one (tq*N_pad, Ce+1) @ (Ce+1, H) MXU matmul instead.
    e_pl = [e_ref[c].astype(f32) for c in range(ce1)]
    rads = []
    for h in range(num_heads):
        acc = e_pl[0] * wrad_ref[0, h]
        for c in range(1, ce1):
            acc = acc + e_pl[c] * wrad_ref[c, h]
        rads.append(acc)
    rad3 = jnp.stack(rads, axis=0)                                  # [H, tq, N_pad]

    # Head-batched logits (contraction over the padded head dim, no explicit transposes).
    logits = jnp.einsum('hdq,hdn->hqn', q3, k3, preferred_element_type=f32) + rad3
    if n_pad > n_valid:                                             # mask padded source columns
        col = jax.lax.broadcasted_iota(jnp.int32, (tq, n_pad), 1)
        logits = logits + jnp.where(col < n_valid, 0.0, -1e30).astype(f32)

    m = jnp.max(logits, axis=-1, keepdims=True)
    p = jnp.exp(logits - m)
    inv = pl.reciprocal(jnp.sum(p, axis=-1, keepdims=True))         # exact: O(tq*H) work only
    attn = (p * inv).astype(bf16)

    o3 = jnp.einsum('hdn,hqn->hdq', v3, attn, preferred_element_type=f32)   # [H, dh_pad, tq]
    ocat = o3.reshape(a_pad, tq).astype(bf16)
    y = y_self + jnp.dot(wo_ref[...], ocat, preferred_element_type=f32)     # [c_hid, tq]

    # NormSE3 (degree-0): LayerNorm over channels + learned scale/shift + ReLU, lane-dense over N.
    # TODO(synk): reference NormSE3 normalizes per-feature norms through a learned nonlinearity;
    # that form is not reproducible from the provided source, approximated here by LayerNorm.
    mu = jnp.mean(y, axis=0, keepdims=True)
    var = jnp.mean((y - mu) * (y - mu), axis=0, keepdims=True)
    yn = (y - mu) * jax.lax.rsqrt(var + 1e-5)
    y_ref[...] = jnp.maximum(yn * gamma_ref[...] + beta_ref[...], 0.0).astype(y_ref.dtype)


# -----------------------------------------------------------------------------
# Final ConvSE3 (sum_over_edge=True, self_interaction=True, degree-0), tiled over destination rows.
# -----------------------------------------------------------------------------
def _conv_out_kernel(e_ref, xf_ref, xt_ref, wradf_ref, wedge_ref, wself_ref, o_ref, *, ce1):
    f32, bf16 = jnp.float32, jnp.bfloat16
    radf = e_ref[0].astype(f32) * wradf_ref[0, 0]
    for c in range(1, ce1):
        radf = radf + e_ref[c].astype(f32) * wradf_ref[c, 0]        # [tq, N_pad]; 0 on padded cols
    msg = jnp.dot(wedge_ref[...], xf_ref[...].astype(bf16),
                  preferred_element_type=f32)                       # [C_out, N_pad]
    # Edge aggregation over sources kept in f32 (parity with the torch reference).
    agg = jax.lax.dot_general(msg, radf, (((1,), (1,)), ((), ())),
                              preferred_element_type=f32)           # [C_out, tq]
    self_t = jnp.dot(wself_ref[...], xt_ref[...].astype(bf16), preferred_element_type=f32)
    o_ref[...] = (agg + self_t).astype(o_ref.dtype)


# -----------------------------------------------------------------------------
# Wrapper
# -----------------------------------------------------------------------------
class SE3TransformerPallas:
    """Degree-0 SE3Transformer: num_layers AttentionBlockSE3 (+NormSE3) then a ConvSE3 head,
    implemented as per-layer row-tiled Pallas calls (grid parallel over destination tiles)."""

    def __init__(self, num_layers, c_in, c_hid, c_out, num_heads, channels_div,
                 c_edge_in, key):
        self.num_layers = num_layers
        self.num_heads = num_heads
        attn_channels = c_hid // channels_div            # channels_div applied before attention
        assert attn_channels % num_heads == 0
        self.dh = attn_channels // num_heads
        self.dh_pad = max(8, _round_up(self.dh, 8))      # sublane-aligned heads (zero-padded)
        self.a_pad = num_heads * self.dh_pad
        self.c_in, self.c_hid, self.c_out = c_in, c_hid, c_out
        self.c_edge = c_edge_in + 1                      # populate_edge='lin' appends radial dim
        self.vmem_limit = _chip_vmem_limit_bytes()

        def w(k, shape):
            return 0.1 * jax.random.normal(k, shape, jnp.float32)

        def pad_heads_t(wt):                             # wt: [A, cin] -> [A_pad, cin], per-head pad
            a, cin = wt.shape
            wt = wt.reshape(num_heads, self.dh, cin)
            wt = jnp.pad(wt, ((0, 0), (0, self.dh_pad - self.dh), (0, 0)))
            return wt.reshape(self.a_pad, cin)

        self.layer_params = []
        cin = c_in
        keys = jax.random.split(key, num_layers + 1)
        for i in range(num_layers):
            k = jax.random.split(keys[i], 8)
            wq = w(k[0], (cin, attn_channels))
            wk = w(k[1], (cin, attn_channels))
            wv = w(k[2], (cin, attn_channels))
            wo = w(k[4], (attn_channels, c_hid))
            wself = w(k[5], (cin, c_hid))
            # channel-major, head-padded, bf16 MXU operands — prepared once, not per call
            wkv_t = jnp.concatenate([pad_heads_t(wk.T), pad_heads_t(wv.T)], axis=0)
            wqs_t = jnp.concatenate([pad_heads_t(wq.T), wself.T], axis=0)
            wo_t = jnp.pad(wo.T.reshape(c_hid, num_heads, self.dh),
                           ((0, 0), (0, 0), (0, self.dh_pad - self.dh))
                           ).reshape(c_hid, self.a_pad)
            self.layer_params.append(dict(
                wkv_t=wkv_t.astype(jnp.bfloat16),        # [2*A_pad, cin]
                wqs_t=wqs_t.astype(jnp.bfloat16),        # [A_pad + c_hid, cin]
                wo_t=wo_t.astype(jnp.bfloat16),          # [c_hid, A_pad]
                wrad=w(k[3], (self.c_edge, num_heads)),  # f32, SMEM
                gamma=jnp.ones((c_hid, 1), jnp.float32),
                beta=jnp.zeros((c_hid, 1), jnp.float32),
                cin=cin,
            ))
            cin = c_hid
        k = jax.random.split(keys[-1], 3)
        self.final_params = dict(
            wradf=w(k[0], (self.c_edge, 1)),                         # f32, SMEM
            wedge_t=w(k[1], (cin, c_out)).T.astype(jnp.bfloat16),    # [c_out, c_hid]
            wself_t=w(k[2], (cin, c_out)).T.astype(jnp.bfloat16),    # [c_out, c_hid]
        )

    def __call__(self, rel_pos, node_feats0, edge_feats0):
        n = rel_pos.shape[0]
        n_pad = _round_up(n, 8) if n <= 128 else _round_up(n, 128)
        tq = n_pad if n_pad <= 128 else 128
        grid = (n_pad // tq,)
        ce1 = self.c_edge

        # populate_edge='lin': r = ||rel_pos|| appended as the last edge channel.  r is computed
        # here in the wrapper so rel_pos itself never becomes kernel HBM->VMEM traffic.
        r = jnp.sqrt(jnp.sum(rel_pos.astype(jnp.float32) ** 2, axis=-1))            # [N, N]
        e_cm = jnp.concatenate(
            [jnp.moveaxis(edge_feats0[:, :, :, 0].astype(jnp.float32), 2, 0), r[None]], axis=0)
        e_cm = jnp.pad(e_cm, ((0, 0), (0, n_pad - n), (0, n_pad - n)))              # [Ce+1, Np, Np]

        # node features channel-major [C, Np] (degree-0 m-dimension of size 1 squeezed)
        x = jnp.pad(node_feats0[:, :, 0].astype(jnp.float32).T, ((0, 0), (0, n_pad - n)))

        comp = pltpu.CompilerParams(dimension_semantics=("parallel",),
                                    vmem_limit_bytes=self.vmem_limit)
        e_spec = pl.BlockSpec((ce1, tq, n_pad), lambda i: (0, i, 0))
        smem_spec = pl.BlockSpec(memory_space=pltpu.MemorySpace.SMEM)

        for p in self.layer_params:
            cin = p["cin"]
            kern = functools.partial(
                _attn_layer_kernel, num_heads=self.num_heads, dh=self.dh,
                dh_pad=self.dh_pad, n_valid=n, n_pad=n_pad, tq=tq, ce1=ce1)
            x = pl.pallas_call(
                kern,
                out_shape=jax.ShapeDtypeStruct((self.c_hid, n_pad), jnp.float32),
                grid=grid,
                in_specs=[e_spec,                                    # edge tile   [Ce+1, tq, Np]
                          _full_spec((cin, n_pad)),                  # x full (K/V sources)
                          pl.BlockSpec((cin, tq), lambda i: (0, i)), # x tile (Q / self)
                          _full_spec(p["wkv_t"].shape),
                          _full_spec(p["wqs_t"].shape),
                          smem_spec,                                 # wrad
                          _full_spec(p["wo_t"].shape),
                          _full_spec(p["gamma"].shape),
                          _full_spec(p["beta"].shape)],
                out_specs=pl.BlockSpec((self.c_hid, tq), lambda i: (0, i)),
                compiler_params=comp,
            )(e_cm, x, x, p["wkv_t"], p["wqs_t"], p["wrad"], p["wo_t"],
              p["gamma"], p["beta"])

        fp = self.final_params
        conv = functools.partial(_conv_out_kernel, ce1=ce1)
        out_cm = pl.pallas_call(
            conv,
            out_shape=jax.ShapeDtypeStruct((self.c_out, n_pad), jnp.float32),
            grid=grid,
            in_specs=[e_spec,
                      _full_spec((self.c_hid, n_pad)),
                      pl.BlockSpec((self.c_hid, tq), lambda i: (0, i)),
                      smem_spec,                                     # wradf
                      _full_spec(fp["wedge_t"].shape),
                      _full_spec(fp["wself_t"].shape)],
            out_specs=pl.BlockSpec((self.c_out, tq), lambda i: (0, i)),
            compiler_params=comp,
        )(e_cm, x, x, fp["wradf"], fp["wedge_t"], fp["wself_t"])

        # return_type = 0 -> node_feats['0'] with shape [N, C_out, 2*0+1]
        return out_cm[:, :n].T[:, :, None]


if __name__ == "__main__":
    N, C_IN, C_HID, C_OUT = 8, 4, 8, 4
    NUM_LAYERS, NUM_HEADS, CH_DIV = 2, 2, 2
    C_EDGE_IN = 1

    key = jax.random.PRNGKey(0)
    k_pos, k_node, k_edge, k_params = jax.random.split(key, 4)

    pos = jax.random.normal(k_pos, (N, 3), jnp.float32)
    rel_pos = pos[:, None, :] - pos[None, :, :]                       # [N, N, 3]
    node_feats0 = jax.random.normal(k_node, (N, C_IN, 1), jnp.float32)
    edge_feats0 = jax.random.normal(k_edge, (N, N, C_EDGE_IN, 1), jnp.float32)

    model = SE3TransformerPallas(NUM_LAYERS, C_IN, C_HID, C_OUT,
                                 NUM_HEADS, CH_DIV, C_EDGE_IN, k_params)

    out = model(rel_pos, node_feats0, edge_feats0)
    out = jax.block_until_ready(out)
    assert out.shape == (N, C_OUT, 1)
    assert bool(jnp.all(jnp.isfinite(out)))
    print("KERNEL_OK")
</pallas_src>

<mosaic_0001>
module attributes {stable_mosaic.version = 11 : i64} {
  func.func @_attn_layer_kernel(%arg0: i32, %arg1: memref<2x8x8xf32, #tpu.memory_space<vmem>>, %arg2: memref<4x8xf32, #tpu.memory_space<vmem>>, %arg3: memref<4x8xf32, #tpu.memory_space<vmem>>, %arg4: memref<32x4xbf16, #tpu.memory_space<vmem>>, %arg5: memref<24x4xbf16, #tpu.memory_space<vmem>>, %arg6: memref<2x2xf32, #tpu.memory_space<smem>>, %arg7: memref<8x16xbf16, #tpu.memory_space<vmem>>, %arg8: memref<8x1xf32, #tpu.memory_space<vmem>>, %arg9: memref<8x1xf32, #tpu.memory_space<vmem>>, %arg10: memref<8x8xf32, #tpu.memory_space<vmem>>) attributes {dimension_semantics = [#tpu.dimension_semantics<parallel>], iteration_bounds = array<i64: 1>, scalar_prefetch = 0 : i64, scratch_operands = 0 : i64, tpu.core_type = #tpu.core_type<tc>, window_params = [{transform_indices = @transform_0, window_bounds = array<i64: 2, 8, 8>}, {pipeline_mode = #tpu.pipeline_mode<synchronous>, transform_indices = @transform_1, window_bounds = array<i64: 4, 8>}, {transform_indices = @transform_2, window_bounds = array<i64: 4, 8>}, {pipeline_mode = #tpu.pipeline_mode<synchronous>, transform_indices = @transform_3, window_bounds = array<i64: 32, 4>}, {pipeline_mode = #tpu.pipeline_mode<synchronous>, transform_indices = @transform_4, window_bounds = array<i64: 24, 4>}, {transform_indices = @transform_5, window_bounds = array<i64: 2, 2>}, {pipeline_mode = #tpu.pipeline_mode<synchronous>, transform_indices = @transform_6, window_bounds = array<i64: 8, 16>}, {pipeline_mode = #tpu.pipeline_mode<synchronous>, transform_indices = @transform_7, window_bounds = array<i64: 8, 1>}, {pipeline_mode = #tpu.pipeline_mode<synchronous>, transform_indices = @transform_8, window_bounds = array<i64: 8, 1>}, {transform_indices = @transform_9, window_bounds = array<i64: 8, 8>}]} {
    %c0 = arith.constant 0 : index
    %c0_0 = arith.constant 0 : index
    %0 = vector.load %arg2[%c0, %c0_0] : memref<4x8xf32, #tpu.memory_space<vmem>>, vector<4x8xf32>
    %1 = arith.truncf %0 : vector<4x8xf32> to vector<4x8xbf16>
    %c0_1 = arith.constant 0 : index
    %c0_2 = arith.constant 0 : index
    %2 = vector.load %arg3[%c0_1, %c0_2] : memref<4x8xf32, #tpu.memory_space<vmem>>, vector<4x8xf32>
    %3 = arith.truncf %2 : vector<4x8xf32> to vector<4x8xbf16>
    %c0_3 = arith.constant 0 : index
    %c0_4 = arith.constant 0 : index
    %4 = vector.load %arg4[%c0_3, %c0_4] : memref<32x4xbf16, #tpu.memory_space<vmem>>, vector<32x4xbf16>
    %cst = arith.constant dense<0.000000e+00> : vector<32x8xf32>
    %5 = tpu.matmul %4, %1, %cst {dimension_numbers = #tpu.dot_dimension_numbers<[1], [0], [0], [1], [0, 0, 1, 1], [], []>} : vector<32x4xbf16>, vector<4x8xbf16>, vector<32x8xf32> -> vector<32x8xf32>
    %c0_5 = arith.constant 0 : index
    %c0_6 = arith.constant 0 : index
    %6 = vector.load %arg5[%c0_5, %c0_6] : memref<24x4xbf16, #tpu.memory_space<vmem>>, vector<24x4xbf16>
    %cst_7 = arith.constant dense<0.000000e+00> : vector<24x8xf32>
    %7 = tpu.matmul %6, %3, %cst_7 {dimension_numbers = #tpu.dot_dimension_numbers<[1], [0], [0], [1], [0, 0, 1, 1], [], []>} : vector<24x4xbf16>, vector<4x8xbf16>, vector<24x8xf32> -> vector<24x8xf32>
    %8 = vector.extract_strided_slice %7 {offsets = [0, 0], sizes = [16, 8], strides = [1, 1]} : vector<24x8xf32> to vector<16x8xf32>
    %cst_8 = arith.constant 0.707106769 : f32
    %9 = vector.broadcast %cst_8 : f32 to vector<16x8xf32>
    %10 = arith.mulf %8, %9 : vector<16x8xf32>
    %11 = vector.shape_cast %10 : vector<16x8xf32> to vector<2x8x8xf32>
    %12 = arith.truncf %11 : vector<2x8x8xf32> to vector<2x8x8xbf16>
    %13 = vector.extract_strided_slice %7 {offsets = [16, 0], sizes = [8, 8], strides = [1, 1]} : vector<24x8xf32> to vector<8x8xf32>
    %14 = vector.extract_strided_slice %5 {offsets = [0, 0], sizes = [16, 8], strides = [1, 1]} : vector<32x8xf32> to vector<16x8xf32>
    %15 = vector.shape_cast %14 : vector<16x8xf32> to vector<2x8x8xf32>
    %16 = arith.truncf %15 : vector<2x8x8xf32> to vector<2x8x8xbf16>
    %17 = vector.extract_strided_slice %5 {offsets = [16, 0], sizes = [16, 8], strides = [1, 1]} : vector<32x8xf32> to vector<16x8xf32>
    %18 = vector.shape_cast %17 : vector<16x8xf32> to vector<2x8x8xf32>
    %19 = arith.truncf %18 : vector<2x8x8xf32> to vector<2x8x8xbf16>
    %c0_9 = arith.constant 0 : index
    %c0_10 = arith.constant 0 : index
    %c0_11 = arith.constant 0 : index
    %20 = vector.load %arg1[%c0_9, %c0_10, %c0_11] : memref<2x8x8xf32, #tpu.memory_space<vmem>>, vector<1x8x8xf32>
    %21 = vector.shape_cast %20 : vector<1x8x8xf32> to vector<8x8xf32>
    %c1 = arith.constant 1 : index
    %c0_12 = arith.constant 0 : index
    %c0_13 = arith.constant 0 : index
    %22 = vector.load %arg1[%c1, %c0_12, %c0_13] : memref<2x8x8xf32, #tpu.memory_space<vmem>>, vector<1x8x8xf32>
    %23 = vector.shape_cast %22 : vector<1x8x8xf32> to vector<8x8xf32>
    %c0_14 = arith.constant 0 : index
    %c0_15 = arith.constant 0 : index
    %24 = memref.load %arg6[%c0_14, %c0_15] : memref<2x2xf32, #tpu.memory_space<smem>>
    %25 = vector.broadcast %24 : f32 to vector<8x8xf32>
    %26 = arith.mulf %21, %25 : vector<8x8xf32>
    %c1_16 = arith.constant 1 : index
    %c0_17 = arith.constant 0 : index
    %27 = memref.load %arg6[%c1_16, %c0_17] : memref<2x2xf32, #tpu.memory_space<smem>>
    %28 = vector.broadcast %27 : f32 to vector<8x8xf32>
    %29 = arith.mulf %23, %28 : vector<8x8xf32>
    %30 = arith.addf %26, %29 : vector<8x8xf32>
    %c0_18 = arith.constant 0 : index
    %c1_19 = arith.constant 1 : index
    %31 = memref.load %arg6[%c0_18, %c1_19] : memref<2x2xf32, #tpu.memory_space<smem>>
    %32 = vector.broadcast %31 : f32 to vector<8x8xf32>
    %33 = arith.mulf %21, %32 : vector<8x8xf32>
    %c1_20 = arith.constant 1 : index
    %c1_21 = arith.constant 1 : index
    %34 = memref.load %arg6[%c1_20, %c1_21] : memref<2x2xf32, #tpu.memory_space<smem>>
    %35 = vector.broadcast %34 : f32 to vector<8x8xf32>
    %36 = arith.mulf %23, %35 : vector<8x8xf32>
    %37 = arith.addf %33, %36 : vector<8x8xf32>
    %38 = vector.shape_cast %30 : vector<8x8xf32> to vector<1x8x8xf32>
    %39 = vector.shape_cast %37 : vector<8x8xf32> to vector<1x8x8xf32>
    %40 = tpu.concatenate %38, %39 in 0 : vector<1x8x8xf32>, vector<1x8x8xf32> -> vector<2x8x8xf32>
    "tpu.trace_start"() <{level = 10 : i32, message = "hdq,hdn->hqn"}> : () -> ()
    %cst_22 = arith.constant dense<0.000000e+00> : vector<2x8x8xf32>
    %41 = tpu.matmul %12, %16, %cst_22 {dimension_numbers = #tpu.dot_dimension_numbers<[1], [1], [2], [2], [0, 0, 0, 2, 1, 2], [0], [0]>} : vector<2x8x8xbf16>, vector<2x8x8xbf16>, vector<2x8x8xf32> -> vector<2x8x8xf32>
    "tpu.trace_stop"() : () -> ()
    %42 = arith.addf %41, %40 : vector<2x8x8xf32>
    %cst_23 = arith.constant dense<0xFF800000> : vector<2x8xf32>
    %43 = vector.multi_reduction <maximumf>, %42, %cst_23 [2] : vector<2x8x8xf32> to vector<2x8xf32>
    %44 = vector.shape_cast %43 : vector<2x8xf32> to vector<2x8x1xf32>
    %45 = vector.broadcast %44 : vector<2x8x1xf32> to vector<2x8x8xf32>
    %46 = arith.subf %42, %45 : vector<2x8x8xf32>
    %47 = math.exp %46 : vector<2x8x8xf32>
    %cst_24 = arith.constant dense<0.000000e+00> : vector<2x8xf32>
    %48 = vector.multi_reduction <add>, %47, %cst_24 [2] : vector<2x8x8xf32> to vector<2x8xf32>
    %49 = vector.shape_cast %48 : vector<2x8xf32> to vector<2x8x1xf32>
    %50 = tpu.reciprocal %49 : vector<2x8x1xf32> -> vector<2x8x1xf32>
    %51 = vector.broadcast %50 : vector<2x8x1xf32> to vector<2x8x8xf32>
    %52 = arith.mulf %47, %51 : vector<2x8x8xf32>
    %53 = arith.truncf %52 : vector<2x8x8xf32> to vector<2x8x8xbf16>
    "tpu.trace_start"() <{level = 10 : i32, message = "hdn,hqn->hdq"}> : () -> ()
    %cst_25 = arith.constant dense<0.000000e+00> : vector<2x8x8xf32>
    %54 = tpu.matmul %19, %53, %cst_25 {dimension_numbers = #tpu.dot_dimension_numbers<[2], [2], [1], [1], [0, 0, 0, 1, 1, 1], [0], [0]>} : vector<2x8x8xbf16>, vector<2x8x8xbf16>, vector<2x8x8xf32> -> vector<2x8x8xf32>
    "tpu.trace_stop"() : () -> ()
    %55 = vector.shape_cast %54 : vector<2x8x8xf32> to vector<16x8xf32>
    %56 = arith.truncf %55 : vector<16x8xf32> to vector<16x8xbf16>
    %c0_26 = arith.constant 0 : index
    %c0_27 = arith.constant 0 : index
    %57 = vector.load %arg7[%c0_26, %c0_27] : memref<8x16xbf16, #tpu.memory_space<vmem>>, vector<8x16xbf16>
    %cst_28 = arith.constant dense<0.000000e+00> : vector<8x8xf32>
    %58 = tpu.matmul %57, %56, %cst_28 {dimension_numbers = #tpu.dot_dimension_numbers<[1], [0], [0], [1], [0, 0, 1, 1], [], []>} : vector<8x16xbf16>, vector<16x8xbf16>, vector<8x8xf32> -> vector<8x8xf32>
    %59 = arith.addf %13, %58 : vector<8x8xf32>
    %cst_29 = arith.constant dense<0.000000e+00> : vector<8xf32>
    %60 = vector.multi_reduction <add>, %59, %cst_29 [0] : vector<8x8xf32> to vector<8xf32>
    %61 = vector.shape_cast %60 : vector<8xf32> to vector<1x8xf32>
    %cst_30 = arith.constant 8.000000e+00 : f32
    %62 = vector.broadcast %cst_30 : f32 to vector<1x8xf32>
    %63 = arith.divf %61, %62 : vector<1x8xf32>
    %64 = vector.broadcast %63 : vector<1x8xf32> to vector<8x8xf32>
    %65 = arith.subf %59, %64 : vector<8x8xf32>
    %66 = vector.broadcast %63 : vector<1x8xf32> to vector<8x8xf32>
    %67 = arith.subf %59, %66 : vector<8x8xf32>
    %68 = arith.mulf %65, %67 : vector<8x8xf32>
    %cst_31 = arith.constant dense<0.000000e+00> : vector<8xf32>
    %69 = vector.multi_reduction <add>, %68, %cst_31 [0] : vector<8x8xf32> to vector<8xf32>
    %70 = vector.shape_cast %69 : vector<8xf32> to vector<1x8xf32>
    %cst_32 = arith.constant 8.000000e+00 : f32
    %71 = vector.broadcast %cst_32 : f32 to vector<1x8xf32>
    %72 = arith.divf %70, %71 : vector<1x8xf32>
    %73 = vector.broadcast %63 : vector<1x8xf32> to vector<8x8xf32>
    %74 = arith.subf %59, %73 : vector<8x8xf32>
    %cst_33 = arith.constant 9.99999974E-6 : f32
    %75 = vector.broadcast %cst_33 : f32 to vector<1x8xf32>
    %76 = arith.addf %72, %75 : vector<1x8xf32>
    %77 = math.rsqrt %76 : vector<1x8xf32>
    %78 = vector.broadcast %77 : vector<1x8xf32> to vector<8x8xf32>
    %79 = arith.mulf %74, %78 : vector<8x8xf32>
    %c0_34 = arith.constant 0 : index
    %c0_35 = arith.constant 0 : index
    %80 = vector.load %arg8[%c0_34, %c0_35] : memref<8x1xf32, #tpu.memory_space<vmem>>, vector<8x1xf32>
    %81 = vector.broadcast %80 : vector<8x1xf32> to vector<8x8xf32>
    %82 = arith.mulf %79, %81 : vector<8x8xf32>
    %c0_36 = arith.constant 0 : index
    %c0_37 = arith.constant 0 : index
    %83 = vector.load %arg9[%c0_36, %c0_37] : memref<8x1xf32, #tpu.memory_space<vmem>>, vector<8x1xf32>
    %84 = vector.broadcast %83 : vector<8x1xf32> to vector<8x8xf32>
    %85 = arith.addf %82, %84 : vector<8x8xf32>
    %cst_38 = arith.constant 0.000000e+00 : f32
    %86 = vector.broadcast %cst_38 : f32 to vector<8x8xf32>
    %87 = arith.maximumf %85, %86 : vector<8x8xf32>
    %c0_39 = arith.constant 0 : index
    %c0_40 = arith.constant 0 : index
    %88 = vector.load %arg10[%c0_39, %c0_40] : memref<8x8xf32, #tpu.memory_space<vmem>>, vector<8x8xf32>
    tpu.vector_store %arg10[%c0_39, %c0_40], %87 {strides = array<i32>} : memref<8x8xf32, #tpu.memory_space<vmem>>, vector<8x8xf32>,
    return
  }
  func.func @transform_0(%arg0: i32) -> (i32, i32, i32) {
    %c0_i32 = arith.constant 0 : i32
    %c0_i32_0 = arith.constant 0 : i32
    %c0_i32_1 = arith.constant 0 : i32
    return %c0_i32, %arg0, %c0_i32_0 : i32, i32, i32
  }
  func.func @transform_1(%arg0: i32) -> (i32, i32) {
    %c0_i32 = arith.constant 0 : i32
    %c0_i32_0 = arith.constant 0 : i32
    %c0_i32_1 = arith.constant 0 : i32
    return %c0_i32, %c0_i32_0 : i32, i32
  }
  func.func @transform_2(%arg0: i32) -> (i32, i32) {
    %c0_i32 = arith.constant 0 : i32
    %c0_i32_0 = arith.constant 0 : i32
    return %c0_i32, %arg0 : i32, i32
  }
  func.func @transform_3(%arg0: i32) -> (i32, i32) {
    %c0_i32 = arith.constant 0 : i32
    %c0_i32_0 = arith.constant 0 : i32
    %c0_i32_1 = arith.constant 0 : i32
    return %c0_i32, %c0_i32_0 : i32, i32
  }
  func.func @transform_4(%arg0: i32) -> (i32, i32) {
    %c0_i32 = arith.constant 0 : i32
    %c0_i32_0 = arith.constant 0 : i32
    %c0_i32_1 = arith.constant 0 : i32
    return %c0_i32, %c0_i32_0 : i32, i32
  }
  func.func @transform_5(%arg0: i32) -> (i32, i32) {
    %c0_i32 = arith.constant 0 : i32
    %c0_i32_0 = arith.constant 0 : i32
    %c0_i32_1 = arith.constant 0 : i32
    return %c0_i32, %c0_i32_0 : i32, i32
  }
  func.func @transform_6(%arg0: i32) -> (i32, i32) {
    %c0_i32 = arith.constant 0 : i32
    %c0_i32_0 = arith.constant 0 : i32
    %c0_i32_1 = arith.constant 0 : i32
    return %c0_i32, %c0_i32_0 : i32, i32
  }
  func.func @transform_7(%arg0: i32) -> (i32, i32) {
    %c0_i32 = arith.constant 0 : i32
    %c0_i32_0 = arith.constant 0 : i32
    %c0_i32_1 = arith.constant 0 : i32
    return %c0_i32, %c0_i32_0 : i32, i32
  }
  func.func @transform_8(%arg0: i32) -> (i32, i32) {
    %c0_i32 = arith.constant 0 : i32
    %c0_i32_0 = arith.constant 0 : i32
    %c0_i32_1 = arith.constant 0 : i32
    return %c0_i32, %c0_i32_0 : i32, i32
  }
  func.func @transform_9(%arg0: i32) -> (i32, i32) {
    %c0_i32 = arith.constant 0 : i32
    %c0_i32_0 = arith.constant 0 : i32
    return %c0_i32, %arg0 : i32, i32
  }
}

</mosaic_0001>

<bundles_post_ra>
// kernel: tpu_custom_call.1
= control target key start
LH: loop header
LB: loop body
LE: loop exit
PB: predicated region body
PF: predicated region fallthrough
CT: control target
= control target key end

     0   :  { %14 = vsyncpa [#allocation4], 0  ;;  %s608_s0 = inlined_call_operand.vmem [shape: f32[2,8,8], index: 0, kind: input, shape index: {}]   ;;  %s609_s1 = inlined_call_operand.vmem [shape: f32[4,8], index: 1, kind: input, shape index: {}]   ;;  %s610_s2 = inlined_call_operand.vmem [shape: f32[4,8], index: 2, kind: input, shape index: {}]   ;;  %s611_s3 = inlined_call_operand.vmem [shape: bf16[32,4], index: 3, kind: input, shape index: {}]   ;;  %s612_s4 = inlined_call_operand.vmem [shape: bf16[24,4], index: 4, kind: input, shape index: {}]   ;;  %s613_s5 = inlined_call_operand.vmem [shape: f32[2,2], index: 5, kind: input, shape index: {}]   ;;  %s614_s6 = inlined_call_operand.vmem [shape: bf16[8,16], index: 6, kind: input, shape index: {}]   ;;  %s615_s7 = inlined_call_operand.vmem [shape: f32[8,1], index: 7, kind: input, shape index: {}]   ;;  %s616_s8 = inlined_call_operand.vmem [shape: f32[8,1], index: 8, kind: input, shape index: {}]   ;;  %s617_s9 = inlined_call_operand.hbm [shape: f32[8,8], index: 9, kind: output, shape index: {}]  }
   0x1   :  { %15 = vsyncpa [#allocation3], 0  ;;  %s31_s11 = sshll.u32 %s613_s5, 4  ;;  %s498_s12 = smov [#allocation2]   ;;  %s32_s11 = int_to_ptr.vmem [resolvable:$true] %s31_s11 }
   0x2   :  { %34 = dma.vmem_to_smem %s32_s11, 32, %s498_s12, [#allocation4]  }
   0x3   :  { %494 = dma.done.wait [#allocation4], 32  }
   0x4   :  { %495 = vsyncadd [#allocation4], 4294967264 }
   0x5   :  { %45 = sfence }
   0x6   :  { %v49_v0 = vld [vmem:[%s610_s2] sm:$0xf]  ;;  %vm72_vm0 = vcmask 1041408   ;;  %vm65_vm1 = vcmask 31744   ;;  %vm178_vm2 = vcmask 1043456   ;;  %vm174_vm3 = vcmask 64512  }
   0x7   :  { %v50_v1 = vpack.c.bf16 %v49_v0, %v49_v0  ;;  %v435_v3 = vld [vmem:[%s612_s4] sm:$0xff]  ;;  %s425_s2 = sld [smem:[#allocation2 + $0x80]]  ;;  %v424_v23 = vld [vmem:[%s608_s0 + $0x8] sm:$0xff]  ;;  %vm320_vm12 = vcmask 130048   ;;  %s398_s13 = sshll.u32 %s617_s9, 4  ;;  %s399_s13 = int_to_ptr.hbm [resolvable:$true] %s398_s13 }
   0x8   :  { %v47_v4 = vld [vmem:[%s609_s1] sm:$0xf]  ;;  %s144_s1 = sld [smem:[#allocation2]]  ;;  %v434_v42 = vld [vmem:[%s611_s3 + $0x8] sm:$0xff] }
   0x9   :  { %v113_v2 = vsel %vm72_vm0, %v50_v1, 0  ;;  %v48_v5 = vpack.c.bf16 %v47_v4, %v47_v4  ;;  %v433_v7 = vld [vmem:[%s611_s3] sm:$0xff]  ;;  %s426_s20 = sld [smem:[#allocation2 + $0x1]] }
   0xa   :  { %122 = vmatpush.bf16.msra.mxu1 %v113_v2  ;;  %v141_v22 = vld [vmem:[%s608_s0] sm:$0xff]  ;;  %s427_s25 = sld [smem:[#allocation2 + $0x81]] }
   0xb   :  { %v74_v6 = vsel %vm72_vm0, %v48_v5, 0 }
   0xc   :  { %83 = vmatpush.bf16.msra.mxu0 %v74_v6 }
   0xd   :  { %422 = vmatmul.msk.bf16.vlgmr.msra.gmra.mxu1 %vm65_vm1, %v435_v3  ;;  %v148_v25 = vstv %s425_s2 }
   0xe   :  { %v145_v24 = vstv %s144_s1  ;;  %v149_v27 = vmul.f32 %v424_v23, %v148_v25  ;;  %v375_v25 = vld [vmem:[%s615_s7] sm:$0xff] }
   0xf   :  { %416 = vmatmul.msk.bf16.vlgmr.msra.gmra.mxu0 %vm65_vm1, %v433_v7  ;;  %v146_v26 = vmul.f32 %v145_v24, %v141_v22  ;;  %v152_v29 = vstv %s426_s20  ;;  %v382_v24 = vld [vmem:[%s616_s8] sm:$0xff] }
  0x10   :  { %v155_v30 = vstv %s427_s25  ;;  %v153_v33 = vmul.f32 %v152_v29, %v141_v22 }
  0x11   :  { %v150_v28 = vadd.f32 %v149_v27, %v146_v26  ;;  %v156_v34 = vmul.f32 %v424_v23, %v155_v30  ;;  %v499_v26 = vmov 0  }
  0x12   :  { %444 = vset.pattern.permute.xlu1 %v499_v26  ;;  %443 = vset.pattern.permute.xlu2 %v499_v26 }
  0x13   :  { %v157_v36 = vadd.f32 %v156_v34, %v153_v33 }
  0x1f   :  { %417 = vmatmul.msk.bf16.gmra.mxu0 %vm65_vm1, %v434_v42 }
  0x8a   :  { %v124_v8 = vpop.f32.mrf.mxu1 }
  0x8b   :  { %v133_v9 = vmul.f32 0.70710677, %v124_v8 }
  0x8c   :  { %v85_v14 = vpop.f32.mrf.mxu0 }
  0x8d   :  { %v135_v12 = vpack.c.bf16 %v133_v9, %v133_v9  ;;  %v137_v15 = vpack.c.bf16 %v85_v14, %v85_v14 }
  0x8f   :  { %v180_v16 = vsel %vm178_vm2, %v137_v15, 0 }
  0x90   :  { %189 = vmatpush.bf16.msra.mxu2 %v180_v16 }
  0x92   :  { %v126_v10 = vpop.f32.mrf.mxu1 }
  0x93   :  { %v134_v11 = vmul.f32 0.70710677, %v126_v10 }
  0x94   :  { %v87_v17 = vpop.f32.mrf.mxu0 }
  0x95   :  { %v136_v13 = vpack.c.bf16 %v134_v11, %v134_v11  ;;  %v138_v18 = vpack.c.bf16 %v87_v17, %v87_v17 }
  0x97   :  { %440 = vxpose.binary.xlu0.c.b16.start.end [1/2] (short) (narrow) %v136_v13, %v135_v12, 16  ;;  %v215_v19 = vsel %vm178_vm2, %v138_v18, 0 }
  0x98   :  { %224 = vmatpush.bf16.msra.mxu3 %v215_v19 }
  0x9c   :  { %v90_v11 = vpop.f32.mrf.mxu0 }
  0x9d   :  { %v139_v15 = vpack.c.bf16 %v90_v11, %v90_v11 }
  0xa4   :  { %v92_v19 = vpop.f32.mrf.mxu0 }
  0xfe   :  { %445 = vset.pattern.permute.xlu0 %v499_v26 }
 0x143   :  { %v441_v20 = vpop.trf.xlu0 }
 0x144   :  { %428 = vmatmul.msk.bf16.vlgmr.msra.gmra.mxu2 %vm174_vm3, %v441_v20  ;;  %v140_v20 = vpack.c.bf16 %v92_v19, %v92_v19 }
 0x14b   :  { %v442_v21 = vpop.trf.xlu0 }
 0x14c   :  { %429 = vmatmul.msk.bf16.vlgmr.msra.gmra.mxu3 %vm174_vm3, %v442_v21  ;;  %v97_v21 = vld [vmem:[%s612_s4 + $0x8] sm:$0xf] }
 0x14d   :  { %v103_v22 = vunpack.c.l.b16 %v97_v21 }
 0x14f   :  { %v105_v23 = vpack.c.b16 %v103_v22, %v103_v22 }
 0x151   :  { %423 = vmatmul.msk.bf16.gmra.mxu1 %vm65_vm1, %v105_v23 }
 0x1c7   :  { %v191_v31 = vpop.f32.mrf.mxu2 }
 0x1c8   :  { %v192_v32 = vadd.f32 %v191_v31, %v150_v28  ;;  %v319_v31 = vld [vmem:[%s614_s6] sm:$0xf]  ;;  %s501_s6 = smov [#allocation5]  }
 0x1c9   :  { %s396_s7 = sshll.u32 %s501_s6, 4  ;;  %s397_s7 = int_to_ptr.vmem [resolvable:$true] %s396_s7 }
 0x1ca   :  { %v230_v35 = vsel %vm174_vm3, %v192_v32, -inf }
 0x1cb   :  { %231 = vmax.xlane.f32.xlu0 %v230_v35  ;;  %v500_v35 = vmov 8.0  }
 0x1ce   :  { %v129_v33 = vpop.f32.mrf.mxu1 }
 0x1cf   :  { %v193_v37 = vpop.f32.mrf.mxu2  ;;  %v226_v38 = vpop.f32.mrf.mxu3 }
 0x1d0   :  { %v227_v39 = vadd.f32 %v226_v38, %v157_v36 }
 0x1d2   :  { %v233_v40 = vsel %vm174_vm3, %v227_v39, -inf }
 0x1d3   :  { %234 = vmax.xlane.f32.xlu1 %v233_v40 }
 0x1d6   :  { %v131_v34 = vpop.f32.mrf.mxu1 }
 0x1d7   :  { %v228_v41 = vpop.f32.mrf.mxu3 }
 0x23e   :  { %v232_v43 = vpop.xlane.xlu0 %231 }
 0x23f   :  { %v236_v44 = vsub.f32 %v192_v32, %v232_v43 }
 0x241   :  { %v238_v45 = vmul.f32 1.442695, %v236_v44 }
 0x243   :  { %446 = vpow2.f32 %v238_v45 }
 0x246   :  { %v235_v46 = vpop.xlane.xlu1 %234 }
 0x247   :  { %v237_v47 = vsub.f32 %v227_v39, %v235_v46 }
 0x249   :  { %v447_v48 = vpop.eup %446  ;;  %v240_v49 = vmul.f32 1.442695, %v237_v47 }
 0x24a   :  { %v242_v50 = vsel %vm174_vm3, %v447_v48, 0.0 }
 0x24b   :  { %448 = vpow2.f32 %v240_v49  ;;  %243 = vadd.xlane.f32.xlu1 %v242_v50 }
 0x251   :  { %v449_v51 = vpop.eup %448 }
 0x252   :  { %v245_v52 = vsel %vm174_vm3, %v449_v51, 0.0 }
 0x253   :  { %246 = vadd.xlane.f32.xlu2 %v245_v52 }
 0x264   :  { %385 = vperm.xlu1 %444, %v382_v24  }
 0x26b   :  { %378 = vperm.xlu2 %443, %v375_v25  }
 0x2be   :  { %v244_v53 = vpop.xlane.xlu1 %243 }
 0x2bf   :  { %450 = vrcp.f32 %v244_v53  ;;  %v259_v58 = vand.u32 2147483648, %v244_v53  ;;  %v257_v60 = vand.u32 2147483647, %v244_v53  ;;  %vm253_vm5 = vweird.f32 %v244_v53 }
 0x2c1   :  { %v260_v63 = vor.u32 1.1754944e-38, %v259_v58  ;;  %vm258_vm7 = vcmp.eq.f32.partialorder %v257_v60, 8.507059e+37 }
 0x2c5   :  { %v451_v54 = vpop.eup %450 }
 0x2c6   :  { %v249_v55 = vmul.f32 %v451_v54, %v244_v53  ;;  %v247_v56 = vpop.xlane.xlu2 %246  ;;  %vm254_vm4 = vweird.f32 %v451_v54 }
 0x2c7   :  { %452 = vrcp.f32 %v247_v56  ;;  %vm255_vm6 = vmor %vm253_vm5, %vm254_vm4  ;;  %v273_v5 = vand.u32 2147483648, %v247_v56  ;;  %v271_v8 = vand.u32 2147483647, %v247_v56  ;;  %vm267_vm9 = vweird.f32 %v247_v56 }
 0x2c8   :  { %v250_v57 = vsub.f32 1.0, %v249_v55  ;;  %454 = vrcp.f32 %v500_v35 }
 0x2c9   :  { %v274_v12 = vor.u32 1.1754944e-38, %v273_v5  ;;  %vm272_vm11 = vcmp.eq.f32.partialorder %v271_v8, 8.507059e+37 }
 0x2ca   :  { %v251_v59 = vmul.f32 %v451_v54, %v250_v57 }
 0x2cc   :  { %v252_v61 = vadd.f32 %v451_v54, %v251_v59 }
 0x2cd   :  { %v453_v62 = vpop.eup %452 }
 0x2ce   :  { %v263_v0 = vmul.f32 %v453_v62, %v247_v56  ;;  %v256_v1 = vsel %vm255_vm6, %v451_v54, %v252_v61  ;;  %vm268_vm8 = vweird.f32 %v453_v62  ;;  %v455_v36 = vpop.eup %454 }
 0x2cf   :  { %v261_v2 = vsel %vm258_vm7, %v260_v63, %v256_v1  ;;  %vm269_vm10 = vmor %vm267_vm9, %vm268_vm8  ;;  %v346_v37 = vmul.f32 8.0, %v455_v36  ;;  %vm350_vm13 = vweird.f32 %v455_v36 }
 0x2d0   :  { %v264_v3 = vsub.f32 1.0, %v263_v0  ;;  %v276_v4 = vmul.f32 %v447_v48, %v261_v2 }
 0x2d1   :  { %v347_v40 = vsub.f32 1.0, %v346_v37 }
 0x2d2   :  { %v265_v6 = vmul.f32 %v453_v62, %v264_v3  ;;  %v278_v7 = vpack.c.bf16 %v276_v4, %v276_v4 }
 0x2d3   :  { %v348_v43 = vmul.f32 %v455_v36, %v347_v40 }
 0x2d4   :  { %v284_v9 = vsel %vm174_vm3, %v278_v7, 0  ;;  %v266_v10 = vadd.f32 %v453_v62, %v265_v6  ;;  %v379_v6 = vpop.permute.xlu2 %378 }
 0x2d5   :  { %293 = vmatpush.bf16.xpose.msrb.mxu2 %v284_v9  ;;  %v349_v47 = vadd.f32 %v455_v36, %v348_v43 }
 0x2d6   :  { %v270_v13 = vsel %vm269_vm10, %v453_v62, %v266_v10  ;;  %v386_v9 = vpop.permute.xlu1 %385 }
 0x2d7   :  { %v275_v14 = vsel %vm272_vm11, %v274_v12, %v270_v13  ;;  %v351_v50 = vsel %vm350_vm13, %v455_v36, %v349_v47 }
 0x2d8   :  { %v277_v16 = vmul.f32 %v449_v51, %v275_v14 }
 0x2da   :  { %v279_v17 = vpack.c.bf16 %v277_v16, %v277_v16 }
 0x2dc   :  { %430 = vmatmul.msk.bf16.vlgmr.msrb.gmra.mxu2 %vm174_vm3, %v139_v15  ;;  %v303_v18 = vsel %vm174_vm3, %v279_v17, 0 }
 0x2dd   :  { %312 = vmatpush.bf16.xpose.msrb.mxu3 %v303_v18 }
 0x2e4   :  { %431 = vmatmul.msk.bf16.vlgmr.msrb.gmra.mxu3 %vm174_vm3, %v140_v20 }
 0x35f   :  { %v295_v27 = vpop.f32.mrf.mxu2 }
 0x367   :  { %v297_v28 = vpop.f32.mrf.mxu2  ;;  %v314_v29 = vpop.f32.mrf.mxu3 }
 0x368   :  { %v318_v30 = vpack.c.bf16 %v314_v29, %v295_v27 }
 0x36a   :  { %331 = vmatpush.bf16.msrb.mxu0 %v318_v30 }
 0x36d   :  { %432 = vmatmul.msk.bf16.vlgmr.msrb.gmra.mxu0 %vm320_vm12, %v319_v31 }
 0x36f   :  { %v316_v32 = vpop.f32.mrf.mxu3 }
 0x3ea   :  { %v333_v38 = vpop.f32.mrf.mxu0 }
 0x3eb   :  { %v337_v39 = vadd.f32 %v333_v38, %v129_v33 }
 0x3ed   :  { %v338_v41 = vsel %vm174_vm3, %v337_v39, 0.0 }
 0x3ee   :  { %v339_v42 = vrot.slane %v338_v41, 4 }
 0x3f0   :  { %v340_v44 = vadd.f32 %v339_v42, %v338_v41 }
 0x3f2   :  { %v341_v45 = vrot.slane %v340_v44, 2  ;;  %v335_v46 = vpop.f32.mrf.mxu0 }
 0x3f4   :  { %v342_v48 = vadd.f32 %v341_v45, %v340_v44 }
 0x3f6   :  { %v343_v49 = vrot.slane %v342_v48, 1 }
 0x3f8   :  { %v344_v51 = vadd.f32 %v343_v49, %v342_v48 }
 0x3fa   :  { %v352_v52 = vmul.f32 %v351_v50, %v344_v51 }
 0x3fc   :  { %v353_v53 = vsub.f32 %v337_v39, %v352_v52 }
 0x3fe   :  { %v354_v54 = vmul.f32 %v353_v53, %v353_v53 }
 0x400   :  { %v355_v55 = vsel %vm174_vm3, %v354_v54, 0.0 }
 0x401   :  { %v356_v56 = vrot.slane %v355_v55, 4 }
 0x403   :  { %v357_v57 = vadd.f32 %v356_v56, %v355_v55 }
 0x405   :  { %v358_v58 = vrot.slane %v357_v57, 2 }
 0x407   :  { %v359_v59 = vadd.f32 %v358_v58, %v357_v57 }
 0x409   :  { %v360_v60 = vrot.slane %v359_v59, 1 }
 0x40b   :  { %v361_v61 = vadd.f32 %v360_v60, %v359_v59 }
 0x40d   :  { %v362_v62 = vmul.f32 %v361_v61, %v351_v50 }
 0x40f   :  { %v363_v63 = vadd.f32 1e-05, %v362_v62 }
 0x411   :  { %456 = vrsqrt.f32 %v363_v63  ;;  %vm370_vm15 = vweird.f32 %v363_v63 }
 0x417   :  { %v457_v0 = vpop.eup %456 }
 0x418   :  { %v365_v1 = vmul.f32 %v457_v0, %v363_v63  ;;  %vm371_vm14 = vweird.f32 %v457_v0 }
 0x419   :  { %vm372_vm0 = vmor %vm370_vm15, %vm371_vm14 }
 0x41a   :  { %v366_v2 = vmul.f32 %v457_v0, %v365_v1 }
 0x41c   :  { %v367_v3 = vmul.f32 0.5, %v366_v2 }
 0x41e   :  { %v368_v4 = vsub.f32 1.5, %v367_v3 }
 0x420   :  { %v369_v5 = vmul.f32 %v457_v0, %v368_v4 }
 0x422   :  { %v373_v7 = vsel %vm372_vm0, %v457_v0, %v369_v5 }
 0x423   :  { %v374_v8 = vmul.f32 %v373_v7, %v353_v53 }
 0x425   :  { %v381_v10 = vmul.f32 %v379_v6, %v374_v8 }
 0x427   :  { %v388_v11 = vadd.f32 %v386_v9, %v381_v10 }
 0x429   :  { %v389_v12 = vmax.f32 %v388_v11, 0.0 }
 0x42b   :  { %390 = vst.msk [vmem:[#allocation5] sm:$0xff] %vm174_vm3, %v389_v12 }
 0x42c   :  { %401 = dma.vmem_to_hbm [thread:$0]  %s397_s7, 128, %s399_s13, [#allocation3]  }
 0x42d   :  { %496 = dma.done.wait [#allocation3], 128  }
 0x42e   :  { %497 = vsyncadd [#allocation3], 4294967168 }
 0x42f   :  { %406 = vsyncpa [#allocation3], 1 }
 0x430   :  { %407 = vsyncpa [#allocation4], 1 }

</bundles_post_ra>
